<compile_context>
chip_gen: v5e
topology: v5e:2x2
jax: 0.10.0
libtpu: 0.0.40
codegen_flags: <defaults>
</compile_context>

<pallas_src>
import math
import functools

import jax
import jax.numpy as jnp
from jax.experimental import pallas as pl
from jax.experimental.pallas import tpu as pltpu


def _round_up(x, m):
    return ((x + m - 1) // m) * m


def _cdiv(a, b):
    return (a + b - 1) // b


def _default_config():
    """Per-generation tile sizes / VMEM budgets (see module docstring)."""
    try:
        kind = jax.devices()[0].device_kind.lower()
    except Exception:  # pragma: no cover - defensive, keep conservative defaults
        kind = ""
    if "v7" in kind:
        # 64 MiB physical VMEM per TC, 2 TCs/chip sharing the parallel axis.
        # AI(tm=512) ~= 341 FLOP/B >= ~310 per-TC ridge.
        return dict(tm=512, tn=2048, vmem_limit_bytes=56 * 1024 * 1024,
                    prefer_two_row_tiles=True)
    if "v6" in kind:
        # 128 MiB VMEM; ridge ~640 FLOP/B -> tm ~1.7-1.8k at E=1024.
        return dict(tm=1792, tn=2048, vmem_limit_bytes=96 * 1024 * 1024,
                    prefer_two_row_tiles=False)
    if "v5 lite" in kind or "v5e" in kind or "v5lite" in kind:
        # ridge ~240 FLOP/B -> tm=512 already makes the final matmul MXU-bound.
        return dict(tm=512, tn=2048, vmem_limit_bytes=80 * 1024 * 1024,
                    prefer_two_row_tiles=False)
    # v4 / v5p have 2 TCs per chip; otherwise conservative defaults.
    two_cores = ("v4" in kind) or ("v5p" in kind)
    return dict(tm=512, tn=2048, vmem_limit_bytes=48 * 1024 * 1024,
                prefer_two_row_tiles=two_cores)


def _lm_head_kernel(x_ref, wd_ref, bd_ref, g_ref, beta_ref, wf_ref, bf_ref,
                    o_ref, hn_ref):
    # ---- dense + gelu + layer_norm: compute once per row tile (j == 0) ----
    # Correctness relies on the vocab axis being "arbitrary": j == 0 executes
    # before every other j for a given i on the same core.  Do NOT mark the
    # vocab grid axis parallel / core-split.
    @pl.when(pl.program_id(1) == 0)
    def _():
        x = x_ref[...]                                    # (tm, E) bf16
        h = jnp.dot(x, wd_ref[...],
                    preferred_element_type=jnp.float32)   # (tm, E) f32 (MXU)
        h = h + bd_ref[...].astype(jnp.float32)           # broadcast (1, E)

        # exact gelu: 0.5 * x * (1 + erf(x / sqrt(2)))
        h = 0.5 * h * (1.0 + jax.lax.erf(h * (1.0 / math.sqrt(2.0))))

        # layer norm over the last axis (eps = 1e-5)
        mean = jnp.mean(h, axis=-1, keepdims=True)
        centered = h - mean
        var = jnp.mean(centered * centered, axis=-1, keepdims=True)
        hn = centered * jax.lax.rsqrt(var + 1e-5)
        hn = hn * g_ref[...].astype(jnp.float32) \
            + beta_ref[...].astype(jnp.float32)

        hn_ref[...] = hn.astype(jnp.bfloat16)             # cached, MXU-ready

    # ---- final projection on this vocab tile: hn @ Wf[:, j] + bf[j] ----
    out = jnp.dot(hn_ref[...], wf_ref[...],
                  preferred_element_type=jnp.float32)      # (tm, tn) f32
    out = out + bf_ref[...].astype(jnp.float32)
    o_ref[...] = out.astype(o_ref.dtype)


def prepare_params(params, *, tn=2048):
    """Pad the vocab dim of w_final / b_final ONCE, OUTSIDE jit.

    Padding the (E x V) weight inside the jitted wrapper would re-materialize a
    full HBM copy of it on every call.  Do it once here instead.  The padded
    vocab size is a multiple of `tn` (or of 128 if V <= tn), so the kernel's
    vocab tile always divides it and output stores stay lane-dense.

    Returns (prepared_params, original_vocab_size).
    """
    assert tn % 128 == 0
    w_final = params["w_final"]
    b_final = params["b_final"]
    V = w_final.shape[1]
    V_pad = _round_up(V, 128) if V <= tn else _round_up(V, tn)
    if V_pad != V:
        w_final = jnp.pad(w_final, ((0, 0), (0, V_pad - V)))
        b_final = jnp.pad(b_final, ((0, 0), (0, V_pad - V)))
    out = dict(params)
    out["w_final"] = w_final
    out["b_final"] = b_final
    return out, V


@functools.partial(
    jax.jit,
    static_argnames=("vocab_size", "tm", "tn", "vmem_limit_bytes",
                     "prefer_two_row_tiles"))
def roberta_lm_head(features, params, *, vocab_size=None, tm=None, tn=None,
                    vmem_limit_bytes=None, prefer_two_row_tiles=None):
    """features: (batch, seq, embed_dim) bf16 -> (batch, seq, vocab) bf16.

    `params` must come from prepare_params() (vocab dim pre-padded outside jit).
    """
    cfg = _default_config()
    tm = cfg["tm"] if tm is None else tm
    tn = cfg["tn"] if tn is None else tn
    vmem_limit_bytes = (cfg["vmem_limit_bytes"]
                        if vmem_limit_bytes is None else vmem_limit_bytes)
    prefer_two_row_tiles = (cfg["prefer_two_row_tiles"]
                            if prefer_two_row_tiles is None
                            else prefer_two_row_tiles)

    B, S, E = features.shape
    V_pad = params["w_final"].shape[1]
    V = V_pad if vocab_size is None else vocab_size
    M = B * S

    assert tn % 128 == 0
    assert V_pad % 128 == 0, \
        "run prepare_params() on the weights first (outside jit)"

    # --- row tiling: multiple of 16 (bf16 sublane packing), clamped to M ---
    tm_eff = min(tm, _round_up(M, 16))
    # Megacore (v7x & friends): make sure >= 2 row tiles exist so both
    # TensorCores get work along the "parallel" i axis.
    if prefer_two_row_tiles and M > 16 and _cdiv(_round_up(M, 16), tm_eff) < 2:
        tm_eff = max(16, _round_up(_cdiv(M, 2), 16))
    M_pad = _round_up(M, tm_eff)

    # --- vocab tiling: lane-dense multiple of 128 that divides padded V ---
    tn_eff = min(tn, V_pad)
    assert V_pad % tn_eff == 0, \
        "prepare_params() must be called with the same `tn` used here"

    grid = (M_pad // tm_eff, V_pad // tn_eff)
    grid_j = grid[1]

    # Pad tokens (rows) with zeros — cheap, stays inside jit.  Zero rows
    # survive gelu/LayerNorm (centered == 0 -> hn == 0) and are sliced off.
    x2d = features.reshape(M, E)
    if M_pad != M:
        x2d = jnp.pad(x2d, ((0, M_pad - M), (0, 0)))

    # The streamed w_final tile is the only per-step HBM DMA of consequence:
    # give it 3-deep buffering so the j == 0 dense+LN bubble and DMA jitter
    # don't expose latency.  (Single-step vocab grids don't need it.)
    if grid_j > 1:
        wf_spec = pl.BlockSpec((E, tn_eff), lambda i, j: (0, j),
                               pipeline_mode=pl.Buffered(3))
    else:
        wf_spec = pl.BlockSpec((E, tn_eff), lambda i, j: (0, j))

    # Advisory cost estimate so XLA schedules the surrounding reshape/slice
    # sensibly around a long-running kernel.
    flops = 2 * M_pad * E * E + 2 * M_pad * E * V_pad
    transcendentals = M_pad * E                       # erf
    bytes_accessed = 2 * (                            # bf16 = 2 bytes
        M_pad * E                                     # x read
        + E * E + 4 * E                               # dense W + biases + LN
        + grid[0] * (E * V_pad + V_pad)               # streamed Wf (+bias)
        + M_pad * V_pad)                              # output write
    cost = pl.CostEstimate(flops=int(flops),
                           transcendentals=int(transcendentals),
                           bytes_accessed=int(bytes_accessed))

    out2d = pl.pallas_call(
        _lm_head_kernel,
        out_shape=jax.ShapeDtypeStruct((M_pad, V_pad), jnp.bfloat16),
        grid_spec=pltpu.PrefetchScalarGridSpec(
            num_scalar_prefetch=0,
            grid=grid,
            in_specs=[
                pl.BlockSpec((tm_eff, E), lambda i, j: (i, 0)),   # tokens
                # Constant-index blocks below stay resident across the grid;
                # their (double-buffered) footprint is already included in the
                # per-generation VMEM budgets.
                pl.BlockSpec((E, E), lambda i, j: (0, 0)),        # dense W
                pl.BlockSpec((1, E), lambda i, j: (0, 0)),        # dense bias
                pl.BlockSpec((1, E), lambda i, j: (0, 0)),        # ln gamma
                pl.BlockSpec((1, E), lambda i, j: (0, 0)),        # ln beta
                wf_spec,                                          # final W tile
                pl.BlockSpec((1, tn_eff), lambda i, j: (0, j)),   # final bias
            ],
            out_specs=pl.BlockSpec((tm_eff, tn_eff), lambda i, j: (i, j)),
            scratch_shapes=[
                pltpu.VMEM((tm_eff, E), jnp.bfloat16),            # cached hn
            ],
        ),
        compiler_params=pltpu.CompilerParams(
            dimension_semantics=("parallel", "arbitrary"),
            vmem_limit_bytes=vmem_limit_bytes,
        ),
        cost_estimate=cost,
    )(
        x2d,
        params["w_dense"], params["b_dense"],
        params["ln_gamma"], params["ln_beta"],
        params["w_final"], params["b_final"],
    )

    return out2d[:M, :V].reshape(B, S, V)


def init_params(key, embed_dim, vocab_size, dtype=jnp.bfloat16):
    """Deterministic init mimicking nn.Linear / nn.LayerNorm defaults."""
    k1, k2, k3, k4 = jax.random.split(key, 4)
    bound = 1.0 / math.sqrt(embed_dim)
    return {
        # Linear weights stored as (in_features, out_features)
        "w_dense": jax.random.uniform(k1, (embed_dim, embed_dim),
                                      minval=-bound, maxval=bound,
                                      dtype=jnp.float32).astype(dtype),
        "b_dense": jax.random.uniform(k2, (1, embed_dim),
                                      minval=-bound, maxval=bound,
                                      dtype=jnp.float32).astype(dtype),
        "ln_gamma": jnp.ones((1, embed_dim), dtype=dtype),
        "ln_beta": jnp.zeros((1, embed_dim), dtype=dtype),
        "w_final": jax.random.uniform(k3, (embed_dim, vocab_size),
                                      minval=-bound, maxval=bound,
                                      dtype=jnp.float32).astype(dtype),
        "b_final": jax.random.uniform(k4, (1, vocab_size),
                                      minval=-bound, maxval=bound,
                                      dtype=jnp.float32).astype(dtype),
    }


def _reference(features, params):
    """Plain-JAX reference of the same forward, for a sanity check."""
    x = features.astype(jnp.float32)
    h = x @ params["w_dense"].astype(jnp.float32) \
        + params["b_dense"].astype(jnp.float32)
    h = 0.5 * h * (1.0 + jax.lax.erf(h / math.sqrt(2.0)))
    mean = jnp.mean(h, axis=-1, keepdims=True)
    var = jnp.mean((h - mean) ** 2, axis=-1, keepdims=True)
    hn = (h - mean) * jax.lax.rsqrt(var + 1e-5)
    hn = hn * params["ln_gamma"].astype(jnp.float32) \
        + params["ln_beta"].astype(jnp.float32)
    out = hn @ params["w_final"].astype(jnp.float32) \
        + params["b_final"].astype(jnp.float32)
    return out.astype(jnp.bfloat16)


if __name__ == "__main__":
    key = jax.random.PRNGKey(0)
    k_feat1, k_par1, k_feat2, k_par2 = jax.random.split(key, 4)

    # ---- case 1: tiny shapes, single vocab tile, default config ----
    batch, seq, embed_dim, vocab_size = 2, 8, 32, 33
    features = jax.random.normal(
        k_feat1, (batch, seq, embed_dim), dtype=jnp.float32
    ).astype(jnp.bfloat16)
    params = init_params(k_par1, embed_dim, vocab_size)
    prepared, V = prepare_params(params, tn=2048)

    out = roberta_lm_head(features, prepared, vocab_size=V, tn=2048)
    out = jax.block_until_ready(out)
    assert out.shape == (batch, seq, vocab_size)
    assert out.dtype == jnp.bfloat16

    ref = _reference(features, params)
    err = jnp.max(jnp.abs(out.astype(jnp.float32) - ref.astype(jnp.float32)))
    assert float(err) < 1e-1, f"case 1 mismatch vs reference: {float(err)}"

    # ---- case 2: small but multi-tile grid (3 x 3) — exercises the hn
    #      caching across both grid axes and the 3-deep Wf pipeline ----
    batch2, seq2, embed_dim2, vocab_size2 = 2, 24, 64, 384
    features2 = jax.random.normal(
        k_feat2, (batch2, seq2, embed_dim2), dtype=jnp.float32
    ).astype(jnp.bfloat16)
    params2 = init_params(k_par2, embed_dim2, vocab_size2)
    prepared2, V2 = prepare_params(params2, tn=128)

    out2 = roberta_lm_head(features2, prepared2, vocab_size=V2, tm=16, tn=128)
    out2 = jax.block_until_ready(out2)
    assert out2.shape == (batch2, seq2, vocab_size2)
    assert out2.dtype == jnp.bfloat16

    ref2 = _reference(features2, params2)
    err2 = jnp.max(jnp.abs(out2.astype(jnp.float32) - ref2.astype(jnp.float32)))
    # bf16 hn cast + larger reduction dim -> slightly looser tolerance
    assert float(err2) < 1.5e-1, f"case 2 mismatch vs reference: {float(err2)}"

    print("KERNEL_OK")
</pallas_src>

<mosaic_0001>
module attributes {stable_mosaic.version = 11 : i64} {
  func.func @_lm_head_kernel(%arg0: i32, %arg1: i32, %arg2: memref<16x32xbf16, #tpu.memory_space<vmem>>, %arg3: memref<32x32xbf16, #tpu.memory_space<vmem>>, %arg4: memref<1x32xbf16, #tpu.memory_space<vmem>>, %arg5: memref<1x32xbf16, #tpu.memory_space<vmem>>, %arg6: memref<1x32xbf16, #tpu.memory_space<vmem>>, %arg7: memref<32x128xbf16, #tpu.memory_space<vmem>>, %arg8: memref<1x128xbf16, #tpu.memory_space<vmem>>, %arg9: memref<16x128xbf16, #tpu.memory_space<vmem>>, %arg10: memref<16x32xbf16, #tpu.memory_space<vmem>>) attributes {dimension_semantics = [#tpu.dimension_semantics<parallel>, #tpu.dimension_semantics<arbitrary>], iteration_bounds = array<i64: 1, 1>, scalar_prefetch = 0 : i64, scratch_operands = 1 : i64, tpu.core_type = #tpu.core_type<tc>, window_params = [{transform_indices = @transform_0, window_bounds = array<i64: 16, 32>}, {pipeline_mode = #tpu.pipeline_mode<synchronous>, transform_indices = @transform_1, window_bounds = array<i64: 32, 32>}, {pipeline_mode = #tpu.pipeline_mode<synchronous>, transform_indices = @transform_2, window_bounds = array<i64: 1, 32>}, {pipeline_mode = #tpu.pipeline_mode<synchronous>, transform_indices = @transform_3, window_bounds = array<i64: 1, 32>}, {pipeline_mode = #tpu.pipeline_mode<synchronous>, transform_indices = @transform_4, window_bounds = array<i64: 1, 32>}, {transform_indices = @transform_5, window_bounds = array<i64: 32, 128>}, {transform_indices = @transform_6, window_bounds = array<i64: 1, 128>}, {transform_indices = @transform_7, window_bounds = array<i64: 16, 128>}]} {
    %c0_i32 = arith.constant 0 : i32
    %0 = arith.cmpi eq, %arg1, %c0_i32 : i32
    %1 = arith.extui %0 : i1 to i32
    %c0_i32_0 = arith.constant 0 : i32
    %2 = arith.cmpi ne, %1, %c0_i32_0 : i32
    scf.if %2 {
      %c0_8 = arith.constant 0 : index
      %c0_9 = arith.constant 0 : index
      %12 = vector.load %arg2[%c0_8, %c0_9] : memref<16x32xbf16, #tpu.memory_space<vmem>>, vector<16x32xbf16>
      %c0_10 = arith.constant 0 : index
      %c0_11 = arith.constant 0 : index
      %13 = vector.load %arg3[%c0_10, %c0_11] : memref<32x32xbf16, #tpu.memory_space<vmem>>, vector<32x32xbf16>
      %cst_12 = arith.constant dense<0.000000e+00> : vector<16x32xf32>
      %14 = tpu.matmul %12, %13, %cst_12 {dimension_numbers = #tpu.dot_dimension_numbers<[1], [0], [0], [1], [0, 0, 1, 1], [], []>} : vector<16x32xbf16>, vector<32x32xbf16>, vector<16x32xf32> -> vector<16x32xf32>
      %c0_13 = arith.constant 0 : index
      %c0_14 = arith.constant 0 : index
      %15 = vector.load %arg4[%c0_13, %c0_14] : memref<1x32xbf16, #tpu.memory_space<vmem>>, vector<1x32xbf16>
      %16 = arith.extf %15 : vector<1x32xbf16> to vector<1x32xf32>
      %17 = vector.broadcast %16 : vector<1x32xf32> to vector<16x32xf32>
      %18 = arith.addf %14, %17 : vector<16x32xf32>
      %cst_15 = arith.constant 5.000000e-01 : f32
      %19 = vector.broadcast %cst_15 : f32 to vector<16x32xf32>
      %20 = arith.mulf %19, %18 : vector<16x32xf32>
      %cst_16 = arith.constant 0.707106769 : f32
      %21 = vector.broadcast %cst_16 : f32 to vector<16x32xf32>
      %22 = arith.mulf %18, %21 : vector<16x32xf32>
      %23 = math.erf %22 : vector<16x32xf32>
      %cst_17 = arith.constant 1.000000e+00 : f32
      %24 = vector.broadcast %cst_17 : f32 to vector<16x32xf32>
      %25 = arith.addf %24, %23 : vector<16x32xf32>
      %26 = arith.mulf %20, %25 : vector<16x32xf32>
      %cst_18 = arith.constant dense<0.000000e+00> : vector<16xf32>
      %27 = vector.multi_reduction <add>, %26, %cst_18 [1] : vector<16x32xf32> to vector<16xf32>
      %28 = vector.shape_cast %27 : vector<16xf32> to vector<16x1xf32>
      %cst_19 = arith.constant 3.200000e+01 : f32
      %29 = vector.broadcast %cst_19 : f32 to vector<16x1xf32>
      %30 = arith.divf %28, %29 : vector<16x1xf32>
      %31 = vector.broadcast %30 : vector<16x1xf32> to vector<16x32xf32>
      %32 = arith.subf %26, %31 : vector<16x32xf32>
      %33 = arith.mulf %32, %32 : vector<16x32xf32>
      %cst_20 = arith.constant dense<0.000000e+00> : vector<16xf32>
      %34 = vector.multi_reduction <add>, %33, %cst_20 [1] : vector<16x32xf32> to vector<16xf32>
      %35 = vector.shape_cast %34 : vector<16xf32> to vector<16x1xf32>
      %cst_21 = arith.constant 3.200000e+01 : f32
      %36 = vector.broadcast %cst_21 : f32 to vector<16x1xf32>
      %37 = arith.divf %35, %36 : vector<16x1xf32>
      %cst_22 = arith.constant 9.99999974E-6 : f32
      %38 = vector.broadcast %cst_22 : f32 to vector<16x1xf32>
      %39 = arith.addf %37, %38 : vector<16x1xf32>
      %40 = math.rsqrt %39 : vector<16x1xf32>
      %41 = vector.broadcast %40 : vector<16x1xf32> to vector<16x32xf32>
      %42 = arith.mulf %32, %41 : vector<16x32xf32>
      %c0_23 = arith.constant 0 : index
      %c0_24 = arith.constant 0 : index
      %43 = vector.load %arg5[%c0_23, %c0_24] : memref<1x32xbf16, #tpu.memory_space<vmem>>, vector<1x32xbf16>
      %44 = arith.extf %43 : vector<1x32xbf16> to vector<1x32xf32>
      %45 = vector.broadcast %44 : vector<1x32xf32> to vector<16x32xf32>
      %46 = arith.mulf %42, %45 : vector<16x32xf32>
      %c0_25 = arith.constant 0 : index
      %c0_26 = arith.constant 0 : index
      %47 = vector.load %arg6[%c0_25, %c0_26] : memref<1x32xbf16, #tpu.memory_space<vmem>>, vector<1x32xbf16>
      %48 = arith.extf %47 : vector<1x32xbf16> to vector<1x32xf32>
      %49 = vector.broadcast %48 : vector<1x32xf32> to vector<16x32xf32>
      %50 = arith.addf %46, %49 : vector<16x32xf32>
      %51 = arith.truncf %50 : vector<16x32xf32> to vector<16x32xbf16>
      %c0_27 = arith.constant 0 : index
      %c0_28 = arith.constant 0 : index
      %52 = vector.load %arg10[%c0_27, %c0_28] : memref<16x32xbf16, #tpu.memory_space<vmem>>, vector<16x32xbf16>
      tpu.vector_store %arg10[%c0_27, %c0_28], %51 {strides = array<i32>} : memref<16x32xbf16, #tpu.memory_space<vmem>>, vector<16x32xbf16>,
    } else {
    }
    %c0 = arith.constant 0 : index
    %c0_1 = arith.constant 0 : index
    %3 = vector.load %arg10[%c0, %c0_1] : memref<16x32xbf16, #tpu.memory_space<vmem>>, vector<16x32xbf16>
    %c0_2 = arith.constant 0 : index
    %c0_3 = arith.constant 0 : index
    %4 = vector.load %arg7[%c0_2, %c0_3] : memref<32x128xbf16, #tpu.memory_space<vmem>>, vector<32x128xbf16>
    %cst = arith.constant dense<0.000000e+00> : vector<16x128xf32>
    %5 = tpu.matmul %3, %4, %cst {dimension_numbers = #tpu.dot_dimension_numbers<[1], [0], [0], [1], [0, 0, 1, 1], [], []>} : vector<16x32xbf16>, vector<32x128xbf16>, vector<16x128xf32> -> vector<16x128xf32>
    %c0_4 = arith.constant 0 : index
    %c0_5 = arith.constant 0 : index
    %6 = vector.load %arg8[%c0_4, %c0_5] : memref<1x128xbf16, #tpu.memory_space<vmem>>, vector<1x128xbf16>
    %7 = arith.extf %6 : vector<1x128xbf16> to vector<1x128xf32>
    %8 = vector.broadcast %7 : vector<1x128xf32> to vector<16x128xf32>
    %9 = arith.addf %5, %8 : vector<16x128xf32>
    %10 = arith.truncf %9 : vector<16x128xf32> to vector<16x128xbf16>
    %c0_6 = arith.constant 0 : index
    %c0_7 = arith.constant 0 : index
    %11 = vector.load %arg9[%c0_6, %c0_7] : memref<16x128xbf16, #tpu.memory_space<vmem>>, vector<16x128xbf16>
    tpu.vector_store %arg9[%c0_6, %c0_7], %10 {strides = array<i32>} : memref<16x128xbf16, #tpu.memory_space<vmem>>, vector<16x128xbf16>,
    return
  }
  func.func @transform_0(%arg0: i32, %arg1: i32) -> (i32, i32) {
    %c0_i32 = arith.constant 0 : i32
    %c0_i32_0 = arith.constant 0 : i32
    return %arg0, %c0_i32 : i32, i32
  }
  func.func @transform_1(%arg0: i32, %arg1: i32) -> (i32, i32) {
    %c0_i32 = arith.constant 0 : i32
    %c0_i32_0 = arith.constant 0 : i32
    %c0_i32_1 = arith.constant 0 : i32
    return %c0_i32, %c0_i32_0 : i32, i32
  }
  func.func @transform_2(%arg0: i32, %arg1: i32) -> (i32, i32) {
    %c0_i32 = arith.constant 0 : i32
    %c0_i32_0 = arith.constant 0 : i32
    %c0_i32_1 = arith.constant 0 : i32
    return %c0_i32, %c0_i32_0 : i32, i32
  }
  func.func @transform_3(%arg0: i32, %arg1: i32) -> (i32, i32) {
    %c0_i32 = arith.constant 0 : i32
    %c0_i32_0 = arith.constant 0 : i32
    %c0_i32_1 = arith.constant 0 : i32
    return %c0_i32, %c0_i32_0 : i32, i32
  }
  func.func @transform_4(%arg0: i32, %arg1: i32) -> (i32, i32) {
    %c0_i32 = arith.constant 0 : i32
    %c0_i32_0 = arith.constant 0 : i32
    %c0_i32_1 = arith.constant 0 : i32
    return %c0_i32, %c0_i32_0 : i32, i32
  }
  func.func @transform_5(%arg0: i32, %arg1: i32) -> (i32, i32) {
    %c0_i32 = arith.constant 0 : i32
    %c0_i32_0 = arith.constant 0 : i32
    return %c0_i32, %arg1 : i32, i32
  }
  func.func @transform_6(%arg0: i32, %arg1: i32) -> (i32, i32) {
    %c0_i32 = arith.constant 0 : i32
    %c0_i32_0 = arith.constant 0 : i32
    return %c0_i32, %arg1 : i32, i32
  }
  func.func @transform_7(%arg0: i32, %arg1: i32) -> (i32, i32) {
    %c0_i32 = arith.constant 0 : i32
    return %arg0, %arg1 : i32, i32
  }
}

</mosaic_0001>

<bundles_post_ra>
// kernel: roberta_lm_head.1
= control target key start
LH: loop header
LB: loop body
LE: loop exit
PB: predicated region body
PF: predicated region fallthrough
CT: control target
= control target key end

     0   :  { %12 = vsyncpa [#allocation4], 0  ;;  %s593_s0 = inlined_call_operand.hbm [shape: bf16[16,32], index: 0, kind: input, shape index: {}]   ;;  %s594_s1 = inlined_call_operand.hbm [shape: bf16[32,32], index: 1, kind: input, shape index: {}]   ;;  %s595_s2 = inlined_call_operand.vmem [shape: bf16[1,32], index: 2, kind: input, shape index: {}]   ;;  %s596_s3 = inlined_call_operand.vmem [shape: bf16[1,32], index: 3, kind: input, shape index: {}]   ;;  %s597_s4 = inlined_call_operand.vmem [shape: bf16[1,32], index: 4, kind: input, shape index: {}]   ;;  %s598_s5 = inlined_call_operand.hbm [shape: bf16[32,128], index: 5, kind: input, shape index: {}]   ;;  %s599_s6 = inlined_call_operand.hbm [shape: bf16[1,128], index: 6, kind: input, shape index: {}]   ;;  %s600_s7 = inlined_call_operand.vmem [shape: bf16[16,128], index: 7, kind: output, shape index: {}]  }
   0x1   :  { %13 = vsyncpa [#allocation6], 0 }
   0x2   :  { %14 = vsyncpa [#allocation9], 0  ;;  %s32_s26 = sshll.u32 %s594_s1, 4  ;;  %s503_s27 = smov [#allocation5]   ;;  %s33_s26 = int_to_ptr.hbm [resolvable:$true] %s32_s26 }
   0x3   :  { %s34_s28 = sshll.u32 %s503_s27, 4  ;;  %s19_s8 = sshll.u32 %s593_s0, 4  ;;  %s35_s28 = int_to_ptr.vmem [resolvable:$true] %s34_s28  ;;  %s20_s8 = int_to_ptr.hbm [resolvable:$true] %s19_s8 }
   0x4   :  { %s504_s9 = smov 64   ;;  %s505_s10 = smov 4  }
   0x5   :  { %40 = dma.hbm_to_vmem [thread:$0]  %s33_s26, 256, %s35_s28, [#allocation6], %s504_s9, %s504_s9, %s505_s10  }
   0x6   :  { %s506_s11 = smov [#allocation3]   ;;  %s51_s15 = sshll.u32 %s598_s5, 4  ;;  %s52_s15 = int_to_ptr.hbm [resolvable:$true] %s51_s15 }
   0x7   :  { %s21_s12 = sshll.u32 %s506_s11, 4  ;;  %s65_s17 = sshll.u32 %s599_s6, 4  ;;  %s22_s12 = int_to_ptr.vmem [resolvable:$true] %s21_s12  ;;  %s66_s17 = int_to_ptr.hbm [resolvable:$true] %s65_s17 }
   0x8   :  { %27 = dma.hbm_to_vmem [thread:$0]  %s20_s8, 128, %s22_s12, [#allocation4], %s504_s9, %s504_s9, %s505_s10  }
   0x9   :  { %s507_s18 = smov [#allocation7]   ;;  %s508_s0 = smov [#allocation8]  }
   0xa   :  { %s53_s19 = sshll.u32 %s507_s18, 4  ;;  %s67_s20 = sshll.u32 %s508_s0, 4  ;;  %s54_s19 = int_to_ptr.vmem [resolvable:$true] %s53_s19  ;;  %s68_s20 = int_to_ptr.vmem [resolvable:$true] %s67_s20 }
   0xb   :  { %59 = dma.hbm_to_vmem [thread:$0]  %s52_s15, 256, %s54_s19, [#allocation6], %s504_s9, %s504_s9, %s505_s10  }
   0xc   :  { %70 = dma.hbm_to_vmem [thread:$0]  %s66_s17, 16, %s68_s20, [#allocation9]  }
   0xd   :  { %497 = dma.done.wait [#allocation4], 128  }
   0xe   :  { %498 = vsyncadd [#allocation4], 4294967168 }
   0xf   :  { %499 = dma.done.wait [#allocation6], 512  }
  0x10   :  { %500 = vsyncadd [#allocation6], 4294966784 }
  0x11   :  { %501 = dma.done.wait [#allocation9], 16  }
  0x12   :  { %502 = vsyncadd [#allocation9], 4294967280  ;;  %v375_v0 = vld [vmem:[#allocation5 + $0x8] sm:$0xff]  ;;  %v374_v1 = vld [vmem:[#allocation5] sm:$0xff]  ;;  %vm118_vm0 = vcmask 261120   ;;  %vm287_vm14 = vcmask 257024  }
  0x13   :  { %128 = vmatpush.bf16.msra.mxu0 %v375_v0  ;;  %v373_v2 = vld [vmem:[#allocation3] sm:$0xff]  ;;  %v98_v3 = vld [vmem:[%s595_s2] sm:$0x1] }
  0x14   :  { %v99_v4 = vunpack.c.l.bf16 %v98_v3 }
  0x16   :  { %v100_v5 = vperm.slane %v99_v4, 0 }
  0x17   :  { %129 = vmatpush.bf16.msra.mxu0 %v374_v1 }
  0x1a   :  { %357 = vmatmul.msk.bf16.vlgmr.msra.gmra.mxu0 %vm118_vm0, %v373_v2 }
  0x97   :  { %v131_v6 = vpop.f32.mrf.mxu0 }
  0x98   :  { %v566_v7 = vadd.f32 %v131_v6, %v100_v5 }
  0x9a   :  { %v138_v8 = vmul.f32 0.70710677, %v566_v7 }
  0x9c   :  { %v140_v9 = vmul.f32 %v138_v8, %v138_v8 }
  0x9e   :  { %v141_v10 = vmin.f32 %v140_v9, 16.0 }
  0x9f   :  { %v133_v11 = vpop.f32.mrf.mxu0 }
  0xa0   :  { %v142_v12 = vmul.f32 2.1237322e-06, %v141_v10  ;;  %v569_v13 = vadd.f32 %v133_v11, %v100_v5  ;;  %v153_v14 = vmul.f32 3.8918573e-05, %v141_v10 }
  0xa2   :  { %v143_v15 = vadd.f32 0.00028619796, %v142_v12  ;;  %v572_v16 = vmul.f32 0.70710677, %v569_v13  ;;  %v154_v17 = vadd.f32 0.001143296, %v153_v14 }
  0xa4   :  { %v144_v18 = vmul.f32 %v143_v15, %v141_v10  ;;  %v180_v19 = vmul.f32 %v572_v16, %v572_v16  ;;  %v155_v20 = vmul.f32 %v154_v17, %v141_v10  ;;  %v136_v15 = vmul.f32 0.5, %v566_v7 }
  0xa6   :  { %v181_v21 = vmin.f32 %v180_v19, 16.0  ;;  %v156_v22 = vadd.f32 0.014752088, %v155_v20  ;;  %v145_v23 = vadd.f32 0.0036580483, %v144_v18 }
  0xa8   :  { %v182_v24 = vmul.f32 2.1237322e-06, %v181_v21  ;;  %v193_v25 = vmul.f32 3.8918573e-05, %v181_v21  ;;  %v157_v26 = vmul.f32 %v156_v22, %v141_v10  ;;  %v146_v30 = vmul.f32 %v145_v23, %v141_v10 }
  0xaa   :  { %v183_v27 = vadd.f32 0.00028619796, %v182_v24  ;;  %v194_v28 = vadd.f32 0.001143296, %v193_v25  ;;  %v158_v29 = vadd.f32 0.112945676, %v157_v26 }
  0xab   :  { %v147_v37 = vadd.f32 0.05243302, %v146_v30  ;;  %v137_v25 = vmul.f32 0.5, %v569_v13 }
  0xac   :  { %v184_v31 = vmul.f32 %v183_v27, %v181_v21  ;;  %v195_v32 = vmul.f32 %v194_v28, %v181_v21  ;;  %v159_v33 = vmul.f32 %v158_v29, %v141_v10  ;;  %v509_v28 = vmov 32.0  }
  0xad   :  { %v148_v43 = vmul.f32 %v147_v37, %v141_v10 }
  0xae   :  { %v196_v34 = vadd.f32 0.014752088, %v195_v32  ;;  %v185_v35 = vadd.f32 0.0036580483, %v184_v31  ;;  %v160_v36 = vadd.f32 0.4994258, %v159_v33 }
  0xaf   :  { %v149_v47 = vadd.f32 0.18741608, %v148_v43 }
  0xb0   :  { %v197_v38 = vmul.f32 %v196_v34, %v181_v21  ;;  %v161_v39 = vmul.f32 %v160_v36, %v141_v10  ;;  %v186_v41 = vmul.f32 %v185_v35, %v181_v21 }
  0xb1   :  { %v150_v52 = vmul.f32 %v149_v47, %v141_v10 }
  0xb2   :  { %v198_v40 = vadd.f32 0.112945676, %v197_v38  ;;  %v162_v42 = vadd.f32 1.0, %v161_v39  ;;  %v187_v46 = vadd.f32 0.05243302, %v186_v41 }
  0xb3   :  { %v151_v57 = vadd.f32 1.1283791, %v150_v52 }
  0xb4   :  { %v199_v44 = vmul.f32 %v198_v40, %v181_v21  ;;  %391 = vrcp.f32 %v162_v42  ;;  %v188_v51 = vmul.f32 %v187_v46, %v181_v21  ;;  %v174_v56 = vand.u32 2147483648, %v162_v42  ;;  %v378_v46 = vld [vmem:[#allocation7 + $0x8] sm:$0xff] }
  0xb5   :  { %v172_v59 = vand.u32 2147483647, %v162_v42  ;;  %vm168_vm2 = vweird.f32 %v162_v42  ;;  %v152_v1 = vmul.f32 %v151_v57, %v138_v8  ;;  %326 = vmatpush.bf16.msra.mxu1 %v378_v46 }
  0xb6   :  { %v200_v45 = vadd.f32 0.4994258, %v199_v44  ;;  %v189_v55 = vadd.f32 0.18741608, %v188_v51  ;;  %v175_v63 = vor.u32 1.1754944e-38, %v174_v56 }
  0xb7   :  { %vm173_vm4 = vcmp.eq.f32.partialorder %v172_v59, 8.507059e+37 }
  0xb8   :  { %v201_v48 = vmul.f32 %v200_v45, %v181_v21  ;;  %v190_v62 = vmul.f32 %v189_v55, %v181_v21  ;;  %v280_v55 = vld [vmem:[%s597_s4] sm:$0x1] }
  0xba   :  { %v202_v49 = vadd.f32 1.0, %v201_v48  ;;  %v392_v50 = vpop.eup %391  ;;  %v191_v9 = vadd.f32 1.1283791, %v190_v62 }
  0xbb   :  { %v164_v53 = vmul.f32 %v392_v50, %v162_v42  ;;  %vm169_vm1 = vweird.f32 %v392_v50 }
  0xbc   :  { %393 = vrcp.f32 %v202_v49  ;;  %vm170_vm3 = vmor %vm168_vm2, %vm169_vm1  ;;  %v214_v6 = vand.u32 2147483648, %v202_v49  ;;  %v212_v11 = vand.u32 2147483647, %v202_v49  ;;  %vm208_vm6 = vweird.f32 %v202_v49 }
  0xbd   :  { %v165_v54 = vsub.f32 1.0, %v164_v53  ;;  %v192_v8 = vmul.f32 %v191_v9, %v572_v16  ;;  %395 = vrcp.f32 %v509_v28  ;;  %v275_v53 = vld [vmem:[%s596_s3] sm:$0x1] }
  0xbe   :  { %v215_v18 = vor.u32 1.1754944e-38, %v214_v6  ;;  %vm213_vm8 = vcmp.eq.f32.partialorder %v212_v11, 8.507059e+37  ;;  %v276_v57 = vunpack.c.l.bf16 %v275_v53 }
  0xbf   :  { %v166_v58 = vmul.f32 %v392_v50, %v165_v54 }
  0xc1   :  { %v167_v61 = vadd.f32 %v392_v50, %v166_v58 }
  0xc2   :  { %v394_v60 = vpop.eup %393 }
  0xc3   :  { %v204_v0 = vmul.f32 %v394_v60, %v202_v49  ;;  %v171_v2 = vsel %vm170_vm3, %v392_v50, %v167_v61  ;;  %vm209_vm5 = vweird.f32 %v394_v60  ;;  %v396_v29 = vpop.eup %395  ;;  %v377_v49 = vld [vmem:[#allocation7] sm:$0xff] }
  0xc4   :  { %v176_v3 = vsel %vm173_vm4, %v175_v63, %v171_v2  ;;  %vm210_vm7 = vmor %vm208_vm6, %vm209_vm5  ;;  %v231_v16 = vmul.f32 32.0, %v396_v29  ;;  %vm235_vm9 = vweird.f32 %v396_v29  ;;  %327 = vmatpush.bf16.msra.mxu1 %v377_v49  ;;  %v277_v63 = vperm.slane %v276_v57, 0 }
  0xc5   :  { %v205_v4 = vsub.f32 1.0, %v204_v0  ;;  %v177_v5 = vmul.f32 %v176_v3, %v152_v1 }
  0xc6   :  { %v232_v30 = vsub.f32 1.0, %v231_v16 }
  0xc7   :  { %v206_v10 = vmul.f32 %v394_v60, %v205_v4  ;;  %v358_v12 = vclamps-f32 %v177_v5, 1.0 }
  0xc8   :  { %v233_v31 = vmul.f32 %v396_v29, %v232_v30 }
  0xc9   :  { %v207_v14 = vadd.f32 %v394_v60, %v206_v10  ;;  %v220_v17 = vadd.f32 1.0, %v358_v12 }
  0xca   :  { %v234_v32 = vadd.f32 %v396_v29, %v233_v31 }
  0xcb   :  { %v211_v19 = vsel %vm210_vm7, %v394_v60, %v207_v14  ;;  %v222_v20 = vmul.f32 %v220_v17, %v136_v15  ;;  %v281_v60 = vunpack.c.l.bf16 %v280_v55 }
  0xcc   :  { %v216_v21 = vsel %vm213_vm8, %v215_v18, %v211_v19  ;;  %v236_v33 = vsel %vm235_vm9, %v396_v29, %v234_v32  ;;  %v296_v19 = vld [vmem:[#allocation8] sm:$0x1] }
  0xcd   :  { %v217_v22 = vmul.f32 %v216_v21, %v192_v8  ;;  %v224_v23 = vsel %vm118_vm0, %v222_v20, 0.0  ;;  %v282_v2 = vperm.slane %v281_v60, 0  ;;  %v297_v21 = vunpack.c.l.bf16 %v296_v19 }
  0xce   :  { %225 = vadd.xlane.f32.xlu0 %v224_v23 }
  0xcf   :  { %v359_v24 = vclamps-f32 %v217_v22, 1.0  ;;  %v298_v22 = vperm.slane %v297_v21, 0 }
  0xd1   :  { %v221_v26 = vadd.f32 1.0, %v359_v24 }
  0xd3   :  { %v223_v27 = vmul.f32 %v221_v26, %v137_v25 }
  0xd5   :  { %v227_v7 = vsel %vm118_vm0, %v223_v27, 0.0 }
  0xd6   :  { %228 = vadd.xlane.f32.xlu0 %v227_v7 }
 0x141   :  { %v226_v34 = vpop.xlane.xlu0 %225 }
 0x142   :  { %v237_v35 = vmul.f32 %v236_v33, %v226_v34 }
 0x144   :  { %v239_v36 = vsub.f32 %v222_v20, %v237_v35 }
 0x146   :  { %v241_v37 = vmul.f32 %v239_v36, %v239_v36 }
 0x148   :  { %v243_v13 = vsel %vm118_vm0, %v241_v37, 0.0 }
 0x149   :  { %244 = vadd.xlane.f32.xlu1 %v243_v13  ;;  %v229_v38 = vpop.xlane.xlu0 %228 }
 0x14a   :  { %v238_v39 = vmul.f32 %v236_v33, %v229_v38 }
 0x14c   :  { %v240_v40 = vsub.f32 %v223_v27, %v238_v39 }
 0x14e   :  { %v242_v41 = vmul.f32 %v240_v40, %v240_v40 }
 0x150   :  { %v246_v42 = vsel %vm118_vm0, %v242_v41, 0.0 }
 0x151   :  { %247 = vadd.xlane.f32.xlu1 %v246_v42 }
 0x1bc   :  { %v245_v43 = vpop.xlane.xlu1 %244 }
 0x1bd   :  { %v249_v44 = vmul.f32 %v245_v43, %v236_v33 }
 0x1bf   :  { %v251_v45 = vadd.f32 1e-05, %v249_v44 }
 0x1c1   :  { %397 = vrsqrt.f32 %v251_v45  ;;  %vm259_vm11 = vweird.f32 %v251_v45 }
 0x1c4   :  { %v248_v47 = vpop.xlane.xlu1 %247 }
 0x1c5   :  { %v250_v48 = vmul.f32 %v248_v47, %v236_v33 }
 0x1c7   :  { %v398_v50 = vpop.eup %397  ;;  %v252_v51 = vadd.f32 1e-05, %v250_v48 }
 0x1c8   :  { %v254_v52 = vmul.f32 %v398_v50, %v251_v45  ;;  %vm260_vm10 = vweird.f32 %v398_v50 }
 0x1c9   :  { %399 = vrsqrt.f32 %v252_v51  ;;  %vm261_vm12 = vmor %vm259_vm11, %vm260_vm10  ;;  %vm269_vm15 = vweird.f32 %v252_v51 }
 0x1ca   :  { %v255_v54 = vmul.f32 %v398_v50, %v254_v52 }
 0x1cc   :  { %v256_v56 = vmul.f32 0.5, %v255_v54 }
 0x1ce   :  { %v257_v58 = vsub.f32 1.5, %v256_v56 }
 0x1cf   :  { %v400_v59 = vpop.eup %399 }
 0x1d0   :  { %v258_v61 = vmul.f32 %v398_v50, %v257_v58  ;;  %v264_v62 = vmul.f32 %v400_v59, %v252_v51  ;;  %vm270_vm13 = vweird.f32 %v400_v59 }
 0x1d1   :  { %vm271_vm1 = vmor %vm269_vm15, %vm270_vm13 }
 0x1d2   :  { %v262_v0 = vsel %vm261_vm12, %v398_v50, %v258_v61  ;;  %v265_v1 = vmul.f32 %v400_v59, %v264_v62 }
 0x1d3   :  { %v273_v3 = vmul.f32 %v262_v0, %v239_v36 }
 0x1d4   :  { %v266_v4 = vmul.f32 0.5, %v265_v1 }
 0x1d5   :  { %v278_v5 = vmul.f32 %v277_v63, %v273_v3 }
 0x1d6   :  { %v267_v6 = vsub.f32 1.5, %v266_v4 }
 0x1d7   :  { %v283_v9 = vadd.f32 %v282_v2, %v278_v5 }
 0x1d8   :  { %v268_v10 = vmul.f32 %v400_v59, %v267_v6 }
 0x1d9   :  { %v285_v11 = vpack.c.bf16 %v283_v9, %v283_v9 }
 0x1da   :  { %v272_v12 = vsel %vm271_vm1, %v400_v59, %v268_v10 }
 0x1db   :  { %288 = vst.msk [vmem:[#allocation2] sm:$0xf] %vm287_vm14, %v285_v11  ;;  %v274_v14 = vmul.f32 %v272_v12, %v240_v40 }
 0x1dd   :  { %v279_v15 = vmul.f32 %v277_v63, %v274_v14 }
 0x1df   :  { %v284_v17 = vadd.f32 %v282_v2, %v279_v15 }
 0x1e1   :  { %v286_v18 = vpack.c.bf16 %v284_v17, %v284_v17 }
 0x1e3   :  { %289 = vst.msk [vmem:[#allocation2 + $0x4] sm:$0xf] %vm287_vm14, %v286_v18 }
 0x1ea   :  { %v376_v8 = vld [vmem:[#allocation2] sm:$0xff] }
 0x1eb   :  { %372 = vmatmul.msk.bf16.vlgmr.msra.gmra.mxu1 %vm118_vm0, %v376_v8 }
 0x268   :  { %v329_v20 = vpop.f32.mrf.mxu1 }
 0x269   :  { %v330_v24 = vadd.f32 %v329_v20, %v298_v22 }
 0x270   :  { %v331_v23 = vpop.f32.mrf.mxu1 }
 0x271   :  { %v332_v25 = vadd.f32 %v331_v23, %v298_v22 }
 0x273   :  { %v382_v26 = vpack.c.bf16 %v332_v25, %v330_v24 }
 0x275   :  { %383 = vst [vmem:[%s600_s7] sm:$0xff] %v382_v26  }
 0x276   :  { %342 = vsyncpa [#allocation4], 1 }
 0x277   :  { %343 = vsyncpa [#allocation6], 1 }
 0x278   :  { %344 = vsyncpa [#allocation9], 1 }

</bundles_post_ra>
